<compile_context>
chip_gen: v7x
topology: tpu7x:2x2x1
jax: 0.10.0
libtpu: 0.0.40
codegen_flags: <defaults>
</compile_context>

<pallas_src>
import numpy as np
import jax
import jax.numpy as jnp
from jax.experimental import pallas as pl
from jax.experimental.pallas import tpu as pltpu

# ---- synthetic "config" (conf_path is not read; shapes chosen per typical tcnn rendering nets)
N_PTS_FREQS = 4                    # pts_encoding: Frequency, n_frequencies=4 -> 3*2*4 = 24 dims
N_DIR_FREQS = 2                    # dir_encoding: Frequency, n_frequencies=2 (unused, see TODO)
ENC_DIM = 3 * 2 * N_PTS_FREQS      # 24
HIDDEN = 64                        # FullyFusedMLP n_neurons
OUT_DIMS = 3                       # RGB
OUT_ROWS = 8                       # sublane-aligned packed output rows; rows 0..2 carry RGB
TILE_N_MAX = 8192                  # large tiles amortize per-grid-step pipeline overhead
TILE_N_MIN = 128                   # lane-dense minimum


def _pick_tile(n):
    """Biggest power-of-two tile <= TILE_N_MAX that still leaves >= 2 grid steps (v7x megacore)."""
    tile = TILE_N_MAX
    while tile > TILE_N_MIN and n < 2 * tile:
        tile //= 2
    return tile


def _render_kernel(pts_ref, w0_ref, w1_ref, w2_ref, o_ref):
    # pts_ref: (3, TILE) f32 raw coordinates (lane-dense).
    # w0_ref : (2*N_PTS_FREQS, HIDDEN, 3) bf16 -- first-layer weights grouped per (freq, sin/cos).
    # w1_ref : (HIDDEN, HIDDEN) bf16 ; w2_ref: (OUT_ROWS, HIDDEN) bf16 (rows >= OUT_DIMS are zero).
    # o_ref  : (OUT_ROWS, TILE) f32.
    x = pts_ref[...]                                   # f32
    # Frequency encoding fused with the first layer: h += W0_g @ trig(2^k * x).
    # Encoding math stays in f32 (VPU/EUP); only the MXU operands are bf16.
    h = None
    for k in range(N_PTS_FREQS):
        ang = x * (2.0 ** k)                           # (3, TILE) f32
        for t, feat in enumerate((jnp.sin(ang), jnp.cos(ang))):
            w_g = w0_ref[2 * k + t]                    # (HIDDEN, 3) bf16
            contrib = jnp.dot(w_g, feat.astype(jnp.bfloat16),
                              preferred_element_type=jnp.float32)
            h = contrib if h is None else h + contrib  # (HIDDEN, TILE) f32
    h = jnp.maximum(h, 0.0).astype(jnp.bfloat16)       # ReLU in f32, bf16 only at MXU boundary
    h = jnp.dot(w1_ref[...], h, preferred_element_type=jnp.float32)
    h = jnp.maximum(h, 0.0).astype(jnp.bfloat16)
    y = jnp.dot(w2_ref[...], h, preferred_element_type=jnp.float32)
    o_ref[...] = jax.nn.sigmoid(y).astype(o_ref.dtype)


@jax.jit
def tcnn_rendering_forward(points, normals, view_dirs, feature_vectors,
                           w0_groups, w1_t, w2_t):
    """Returns a packed (OUT_ROWS, N) f32 array; rows 0..OUT_DIMS-1 are the RGB channels.

    The packed channel-major output keeps the kernel's HBM stores lane-dense and avoids an
    extra slice pass; unpack at the point of use (rgb = out[:OUT_DIMS].T).
    """
    del normals, feature_vectors, view_dirs   # not consumed by the network (see TODO above)
    n = points.shape[0]
    tile = _pick_tile(n)
    n_pad = pl.cdiv(n, tile) * tile

    # Layout plumbing only: present points channel-major / lane-dense to the kernel.
    pts_t = points.astype(jnp.float32).T                      # (3, N)
    if n_pad != n:
        pts_t = jnp.pad(pts_t, ((0, 0), (0, n_pad - n)))      # ragged batch -> pad, no assert

    grid = (n_pad // tile,)
    out = pl.pallas_call(
        _render_kernel,
        out_shape=jax.ShapeDtypeStruct((OUT_ROWS, n_pad), jnp.float32),
        grid_spec=pltpu.PrefetchScalarGridSpec(
            num_scalar_prefetch=0,
            grid=grid,
            in_specs=[
                pl.BlockSpec((3, tile), lambda i: (0, i)),
                # Weights are tiny and resident across the grid (constant block index).
                pl.BlockSpec((2 * N_PTS_FREQS, HIDDEN, 3), lambda i: (0, 0, 0)),
                pl.BlockSpec((HIDDEN, HIDDEN), lambda i: (0, 0)),
                pl.BlockSpec((OUT_ROWS, HIDDEN), lambda i: (0, 0)),
            ],
            out_specs=pl.BlockSpec((OUT_ROWS, tile), lambda i: (0, i)),
        ),
        compiler_params=pltpu.CompilerParams(
            dimension_semantics=("parallel",),        # shards batch tiles across v7x's 2 TCs
            vmem_limit_bytes=32 * 1024 * 1024,        # v5e default is 16 MiB; give headroom
        ),
    )(pts_t, w0_groups, w1_t, w2_t)

    if n_pad != n:
        out = out[:, :n]
    return out


def rgb_from_output(out):
    """Unpack the kernel's lane-dense (OUT_ROWS, N) output into (N, 3) RGB."""
    return out[:OUT_DIMS].T


def init_params(key):
    """bf16, feature-major weights matching the kernel's channel-major dataflow (bias-free MLP)."""
    k0, k1, k2 = jax.random.split(key, 3)
    # First layer grouped per (frequency, sin/cos): w0_groups[2k+t, o, c] multiplies
    # trig_t(2^k * x_c); equivalent dense layout is W0_std[3*(2k+t)+c, o].
    w0_groups = (jax.random.normal(k0, (2 * N_PTS_FREQS, HIDDEN, 3), jnp.float32)
                 * 0.1).astype(jnp.bfloat16)
    w1_t = (jax.random.normal(k1, (HIDDEN, HIDDEN), jnp.float32) * 0.1).astype(jnp.bfloat16)
    w2_core = jax.random.normal(k2, (OUT_DIMS, HIDDEN), jnp.float32) * 0.1
    w2_t = jnp.zeros((OUT_ROWS, HIDDEN), jnp.float32).at[:OUT_DIMS].set(
        w2_core).astype(jnp.bfloat16)
    return w0_groups, w1_t, w2_t


if __name__ == "__main__":
    key = jax.random.PRNGKey(0)
    kp, kn, kd, kf, kw = jax.random.split(key, 5)

    N = 256   # small demo batch; tile picker drops to 128 -> 2 grid steps
    points = jax.random.uniform(kp, (N, 3), jnp.float32, -1.0, 1.0)
    normals = jax.random.normal(kn, (N, 3), jnp.float32)
    view_dirs = jax.random.normal(kd, (N, 3), jnp.float32)
    view_dirs = view_dirs / jnp.linalg.norm(view_dirs, axis=-1, keepdims=True)
    feature_vectors = jax.random.normal(kf, (N, 16), jnp.float32)

    w0_groups, w1_t, w2_t = init_params(kw)

    out = tcnn_rendering_forward(points, normals, view_dirs, feature_vectors,
                                 w0_groups, w1_t, w2_t)
    out = jax.block_until_ready(out)
    rgb = rgb_from_output(out)                                  # (N, 3)

    # Plain-JAX f32 reference (kernel uses bf16 storage -> loosened tolerance).
    w0_std = jnp.transpose(w0_groups.astype(jnp.float32), (0, 2, 1)).reshape(ENC_DIM, HIDDEN)
    w1_std = w1_t.astype(jnp.float32).T
    w2_std = w2_t.astype(jnp.float32).T
    feats = []
    for k in range(N_PTS_FREQS):
        ang = points * (2.0 ** k)
        feats += [jnp.sin(ang), jnp.cos(ang)]
    enc = jnp.concatenate(feats, axis=-1)                       # (N, 24)
    h = jnp.maximum(enc @ w0_std, 0.0)
    h = jnp.maximum(h @ w1_std, 0.0)
    ref = jax.nn.sigmoid(h @ w2_std)[:, :OUT_DIMS]

    assert rgb.shape == (N, OUT_DIMS)
    assert jnp.allclose(rgb, ref, atol=2e-2), "mismatch vs reference"

    print("KERNEL_OK")
</pallas_src>

<mosaic_0001>
module attributes {stable_mosaic.version = 11 : i64} {
  func.func @_render_kernel(%arg0: i32, %arg1: memref<3x128xf32, #tpu.memory_space<vmem>>, %arg2: memref<8x64x3xbf16, #tpu.memory_space<vmem>>, %arg3: memref<64x64xbf16, #tpu.memory_space<vmem>>, %arg4: memref<8x64xbf16, #tpu.memory_space<vmem>>, %arg5: memref<8x128xf32, #tpu.memory_space<vmem>>) attributes {dimension_semantics = [#tpu.dimension_semantics<parallel>], iteration_bounds = array<i64: 2>, scalar_prefetch = 0 : i64, scratch_operands = 0 : i64, tpu.core_type = #tpu.core_type<tc>, window_params = [{transform_indices = @transform_0, window_bounds = array<i64: 3, 128>}, {pipeline_mode = #tpu.pipeline_mode<synchronous>, transform_indices = @transform_1, window_bounds = array<i64: 8, 64, 3>}, {pipeline_mode = #tpu.pipeline_mode<synchronous>, transform_indices = @transform_2, window_bounds = array<i64: 64, 64>}, {pipeline_mode = #tpu.pipeline_mode<synchronous>, transform_indices = @transform_3, window_bounds = array<i64: 8, 64>}, {transform_indices = @transform_4, window_bounds = array<i64: 8, 128>}]} {
    %c0 = arith.constant 0 : index
    %c0_0 = arith.constant 0 : index
    %0 = vector.load %arg1[%c0, %c0_0] : memref<3x128xf32, #tpu.memory_space<vmem>>, vector<3x128xf32>
    %cst = arith.constant 1.000000e+00 : f32
    %1 = vector.broadcast %cst : f32 to vector<3x128xf32>
    %2 = arith.mulf %0, %1 : vector<3x128xf32>
    %3 = math.sin %2 : vector<3x128xf32>
    %4 = math.cos %2 : vector<3x128xf32>
    %c0_1 = arith.constant 0 : index
    %c0_2 = arith.constant 0 : index
    %c0_3 = arith.constant 0 : index
    %5 = vector.load %arg2[%c0_1, %c0_2, %c0_3] : memref<8x64x3xbf16, #tpu.memory_space<vmem>>, vector<1x64x3xbf16>
    %6 = vector.shape_cast %5 : vector<1x64x3xbf16> to vector<64x3xbf16>
    %7 = arith.truncf %3 : vector<3x128xf32> to vector<3x128xbf16>
    %cst_4 = arith.constant dense<0.000000e+00> : vector<64x128xf32>
    %8 = tpu.matmul %6, %7, %cst_4 {dimension_numbers = #tpu.dot_dimension_numbers<[1], [0], [0], [1], [0, 0, 1, 1], [], []>} : vector<64x3xbf16>, vector<3x128xbf16>, vector<64x128xf32> -> vector<64x128xf32>
    %c1 = arith.constant 1 : index
    %c0_5 = arith.constant 0 : index
    %c0_6 = arith.constant 0 : index
    %9 = vector.load %arg2[%c1, %c0_5, %c0_6] : memref<8x64x3xbf16, #tpu.memory_space<vmem>>, vector<1x64x3xbf16>
    %10 = vector.shape_cast %9 : vector<1x64x3xbf16> to vector<64x3xbf16>
    %11 = arith.truncf %4 : vector<3x128xf32> to vector<3x128xbf16>
    %cst_7 = arith.constant dense<0.000000e+00> : vector<64x128xf32>
    %12 = tpu.matmul %10, %11, %cst_7 {dimension_numbers = #tpu.dot_dimension_numbers<[1], [0], [0], [1], [0, 0, 1, 1], [], []>} : vector<64x3xbf16>, vector<3x128xbf16>, vector<64x128xf32> -> vector<64x128xf32>
    %13 = arith.addf %8, %12 : vector<64x128xf32>
    %cst_8 = arith.constant 2.000000e+00 : f32
    %14 = vector.broadcast %cst_8 : f32 to vector<3x128xf32>
    %15 = arith.mulf %0, %14 : vector<3x128xf32>
    %16 = math.sin %15 : vector<3x128xf32>
    %17 = math.cos %15 : vector<3x128xf32>
    %c2 = arith.constant 2 : index
    %c0_9 = arith.constant 0 : index
    %c0_10 = arith.constant 0 : index
    %18 = vector.load %arg2[%c2, %c0_9, %c0_10] : memref<8x64x3xbf16, #tpu.memory_space<vmem>>, vector<1x64x3xbf16>
    %19 = vector.shape_cast %18 : vector<1x64x3xbf16> to vector<64x3xbf16>
    %20 = arith.truncf %16 : vector<3x128xf32> to vector<3x128xbf16>
    %cst_11 = arith.constant dense<0.000000e+00> : vector<64x128xf32>
    %21 = tpu.matmul %19, %20, %cst_11 {dimension_numbers = #tpu.dot_dimension_numbers<[1], [0], [0], [1], [0, 0, 1, 1], [], []>} : vector<64x3xbf16>, vector<3x128xbf16>, vector<64x128xf32> -> vector<64x128xf32>
    %22 = arith.addf %13, %21 : vector<64x128xf32>
    %c3 = arith.constant 3 : index
    %c0_12 = arith.constant 0 : index
    %c0_13 = arith.constant 0 : index
    %23 = vector.load %arg2[%c3, %c0_12, %c0_13] : memref<8x64x3xbf16, #tpu.memory_space<vmem>>, vector<1x64x3xbf16>
    %24 = vector.shape_cast %23 : vector<1x64x3xbf16> to vector<64x3xbf16>
    %25 = arith.truncf %17 : vector<3x128xf32> to vector<3x128xbf16>
    %cst_14 = arith.constant dense<0.000000e+00> : vector<64x128xf32>
    %26 = tpu.matmul %24, %25, %cst_14 {dimension_numbers = #tpu.dot_dimension_numbers<[1], [0], [0], [1], [0, 0, 1, 1], [], []>} : vector<64x3xbf16>, vector<3x128xbf16>, vector<64x128xf32> -> vector<64x128xf32>
    %27 = arith.addf %22, %26 : vector<64x128xf32>
    %cst_15 = arith.constant 4.000000e+00 : f32
    %28 = vector.broadcast %cst_15 : f32 to vector<3x128xf32>
    %29 = arith.mulf %0, %28 : vector<3x128xf32>
    %30 = math.sin %29 : vector<3x128xf32>
    %31 = math.cos %29 : vector<3x128xf32>
    %c4 = arith.constant 4 : index
    %c0_16 = arith.constant 0 : index
    %c0_17 = arith.constant 0 : index
    %32 = vector.load %arg2[%c4, %c0_16, %c0_17] : memref<8x64x3xbf16, #tpu.memory_space<vmem>>, vector<1x64x3xbf16>
    %33 = vector.shape_cast %32 : vector<1x64x3xbf16> to vector<64x3xbf16>
    %34 = arith.truncf %30 : vector<3x128xf32> to vector<3x128xbf16>
    %cst_18 = arith.constant dense<0.000000e+00> : vector<64x128xf32>
    %35 = tpu.matmul %33, %34, %cst_18 {dimension_numbers = #tpu.dot_dimension_numbers<[1], [0], [0], [1], [0, 0, 1, 1], [], []>} : vector<64x3xbf16>, vector<3x128xbf16>, vector<64x128xf32> -> vector<64x128xf32>
    %36 = arith.addf %27, %35 : vector<64x128xf32>
    %c5 = arith.constant 5 : index
    %c0_19 = arith.constant 0 : index
    %c0_20 = arith.constant 0 : index
    %37 = vector.load %arg2[%c5, %c0_19, %c0_20] : memref<8x64x3xbf16, #tpu.memory_space<vmem>>, vector<1x64x3xbf16>
    %38 = vector.shape_cast %37 : vector<1x64x3xbf16> to vector<64x3xbf16>
    %39 = arith.truncf %31 : vector<3x128xf32> to vector<3x128xbf16>
    %cst_21 = arith.constant dense<0.000000e+00> : vector<64x128xf32>
    %40 = tpu.matmul %38, %39, %cst_21 {dimension_numbers = #tpu.dot_dimension_numbers<[1], [0], [0], [1], [0, 0, 1, 1], [], []>} : vector<64x3xbf16>, vector<3x128xbf16>, vector<64x128xf32> -> vector<64x128xf32>
    %41 = arith.addf %36, %40 : vector<64x128xf32>
    %cst_22 = arith.constant 8.000000e+00 : f32
    %42 = vector.broadcast %cst_22 : f32 to vector<3x128xf32>
    %43 = arith.mulf %0, %42 : vector<3x128xf32>
    %44 = math.sin %43 : vector<3x128xf32>
    %45 = math.cos %43 : vector<3x128xf32>
    %c6 = arith.constant 6 : index
    %c0_23 = arith.constant 0 : index
    %c0_24 = arith.constant 0 : index
    %46 = vector.load %arg2[%c6, %c0_23, %c0_24] : memref<8x64x3xbf16, #tpu.memory_space<vmem>>, vector<1x64x3xbf16>
    %47 = vector.shape_cast %46 : vector<1x64x3xbf16> to vector<64x3xbf16>
    %48 = arith.truncf %44 : vector<3x128xf32> to vector<3x128xbf16>
    %cst_25 = arith.constant dense<0.000000e+00> : vector<64x128xf32>
    %49 = tpu.matmul %47, %48, %cst_25 {dimension_numbers = #tpu.dot_dimension_numbers<[1], [0], [0], [1], [0, 0, 1, 1], [], []>} : vector<64x3xbf16>, vector<3x128xbf16>, vector<64x128xf32> -> vector<64x128xf32>
    %50 = arith.addf %41, %49 : vector<64x128xf32>
    %c7 = arith.constant 7 : index
    %c0_26 = arith.constant 0 : index
    %c0_27 = arith.constant 0 : index
    %51 = vector.load %arg2[%c7, %c0_26, %c0_27] : memref<8x64x3xbf16, #tpu.memory_space<vmem>>, vector<1x64x3xbf16>
    %52 = vector.shape_cast %51 : vector<1x64x3xbf16> to vector<64x3xbf16>
    %53 = arith.truncf %45 : vector<3x128xf32> to vector<3x128xbf16>
    %cst_28 = arith.constant dense<0.000000e+00> : vector<64x128xf32>
    %54 = tpu.matmul %52, %53, %cst_28 {dimension_numbers = #tpu.dot_dimension_numbers<[1], [0], [0], [1], [0, 0, 1, 1], [], []>} : vector<64x3xbf16>, vector<3x128xbf16>, vector<64x128xf32> -> vector<64x128xf32>
    %55 = arith.addf %50, %54 : vector<64x128xf32>
    %cst_29 = arith.constant 0.000000e+00 : f32
    %56 = vector.broadcast %cst_29 : f32 to vector<64x128xf32>
    %57 = arith.maximumf %55, %56 : vector<64x128xf32>
    %58 = arith.truncf %57 : vector<64x128xf32> to vector<64x128xbf16>
    %c0_30 = arith.constant 0 : index
    %c0_31 = arith.constant 0 : index
    %59 = vector.load %arg3[%c0_30, %c0_31] : memref<64x64xbf16, #tpu.memory_space<vmem>>, vector<64x64xbf16>
    %cst_32 = arith.constant dense<0.000000e+00> : vector<64x128xf32>
    %60 = tpu.matmul %59, %58, %cst_32 {dimension_numbers = #tpu.dot_dimension_numbers<[1], [0], [0], [1], [0, 0, 1, 1], [], []>} : vector<64x64xbf16>, vector<64x128xbf16>, vector<64x128xf32> -> vector<64x128xf32>
    %cst_33 = arith.constant 0.000000e+00 : f32
    %61 = vector.broadcast %cst_33 : f32 to vector<64x128xf32>
    %62 = arith.maximumf %60, %61 : vector<64x128xf32>
    %63 = arith.truncf %62 : vector<64x128xf32> to vector<64x128xbf16>
    %c0_34 = arith.constant 0 : index
    %c0_35 = arith.constant 0 : index
    %64 = vector.load %arg4[%c0_34, %c0_35] : memref<8x64xbf16, #tpu.memory_space<vmem>>, vector<8x64xbf16>
    %cst_36 = arith.constant dense<0.000000e+00> : vector<8x128xf32>
    %65 = tpu.matmul %64, %63, %cst_36 {dimension_numbers = #tpu.dot_dimension_numbers<[1], [0], [0], [1], [0, 0, 1, 1], [], []>} : vector<8x64xbf16>, vector<64x128xbf16>, vector<8x128xf32> -> vector<8x128xf32>
    %66 = arith.negf %65 : vector<8x128xf32>
    %67 = math.exp %66 : vector<8x128xf32>
    %cst_37 = arith.constant 1.000000e+00 : f32
    %68 = vector.broadcast %cst_37 : f32 to vector<8x128xf32>
    %69 = arith.addf %68, %67 : vector<8x128xf32>
    %70 = arith.divf %68, %69 : vector<8x128xf32>
    %c0_38 = arith.constant 0 : index
    %c0_39 = arith.constant 0 : index
    %71 = vector.load %arg5[%c0_38, %c0_39] : memref<8x128xf32, #tpu.memory_space<vmem>>, vector<8x128xf32>
    tpu.vector_store %arg5[%c0_38, %c0_39], %70 {strides = array<i32>} : memref<8x128xf32, #tpu.memory_space<vmem>>, vector<8x128xf32>,
    return
  }
  func.func @transform_0(%arg0: i32) -> (i32, i32) {
    %c0_i32 = arith.constant 0 : i32
    %c0_i32_0 = arith.constant 0 : i32
    return %c0_i32, %arg0 : i32, i32
  }
  func.func @transform_1(%arg0: i32) -> (i32, i32, i32) {
    %c0_i32 = arith.constant 0 : i32
    %c0_i32_0 = arith.constant 0 : i32
    %c0_i32_1 = arith.constant 0 : i32
    %c0_i32_2 = arith.constant 0 : i32
    return %c0_i32, %c0_i32_0, %c0_i32_1 : i32, i32, i32
  }
  func.func @transform_2(%arg0: i32) -> (i32, i32) {
    %c0_i32 = arith.constant 0 : i32
    %c0_i32_0 = arith.constant 0 : i32
    %c0_i32_1 = arith.constant 0 : i32
    return %c0_i32, %c0_i32_0 : i32, i32
  }
  func.func @transform_3(%arg0: i32) -> (i32, i32) {
    %c0_i32 = arith.constant 0 : i32
    %c0_i32_0 = arith.constant 0 : i32
    %c0_i32_1 = arith.constant 0 : i32
    return %c0_i32, %c0_i32_0 : i32, i32
  }
  func.func @transform_4(%arg0: i32) -> (i32, i32) {
    %c0_i32 = arith.constant 0 : i32
    %c0_i32_0 = arith.constant 0 : i32
    return %c0_i32, %arg0 : i32, i32
  }
}

</mosaic_0001>

<bundles_post_ra>
// kernel: tcnn_rendering_forward.1
= control target key start
LH: loop header
LB: loop body
LE: loop exit
PB: predicated region body
PF: predicated region fallthrough
CT: control target
= control target key end

     0   :  { %9 = vsyncpa [#allocation3], 0  ;;  %s3415_s0 = inlined_call_operand.vmem [shape: f32[3,256], index: 0, kind: input, shape index: {}]   ;;  %s3416_s1 = inlined_call_operand.vmem [shape: bf16[8,64,3], index: 1, kind: input, shape index: {}]   ;;  %s3417_s2 = inlined_call_operand.vmem [shape: bf16[64,64], index: 2, kind: input, shape index: {}]   ;;  %s3418_s3 = inlined_call_operand.vmem [shape: bf16[8,64], index: 3, kind: input, shape index: {}]   ;;  %s3419_s4 = inlined_call_operand.hbm [shape: f32[8,256], index: 4, kind: output, shape index: {}]  }
   0x1   :  { %11 = vsyncpa [#allocation3 + $0x1], 0  ;;  %s2820_s15 = smov 0   ;;  %s2822_s16 = smov 0  }
   0x2   :  { %s2824_s17 = smov 0   ;;  %s2826_s18 = smov 0  }
   0x3 LB: > { %s2841_s19 = sadd.s32 4294967295, %s2783_s18   ;;  %s2212_s20 = sadd.s32 4294967294, %s2783_s18   ;;  %s2783_s18 = sphi %s2826_s18, %s3431_s18   ;;  %s2779_s17 = sphi %s2824_s17, %s3430_s17   ;;  %s2775_s16 = sphi %s2822_s16, %s3429_s16   ;;  %s2771_s15 = sphi %s2820_s15, %s3428_s15  }
   0x4   : > { %s2845_s21 = sadd.s32 1, %s2783_s18   ;;  %s113_s22 = sadd.s32 1, %s2779_s17 }
   0x5   : > { %s110_s23 = ssub.s32 %s2783_s18, %s2845_s21  ;;  %p123_p0 = scmp.ne.s32.totalorder %s2779_s17, %s2775_s16 }
   0x6   : > { %p111_p1 = scmp.eq.s32.totalorder %s110_s23, 0  ;;  %p124_p2 = scmp.eq.s32.totalorder %s2841_s19, 1 }
   0x7   : > { %p129_p3 = scmp.ne.s32.totalorder %s2775_s16, %s2771_s15  ;;  %p130_p4 = scmp.eq.s32.totalorder %s2212_s20, 1 }
   0x8   : > { %s2856_s24 = scalar_select %p111_p1, %s2779_s17, %s113_s22  }
   0x9   : > { %p2858_p5 = por %p124_p2, %p123_p0  ;;  %p2862_p6 = por %p130_p4, %p129_p3 }
   0xa   : > { %p2215_p7 = scmp.ge.s32.totalorder %s2783_s18, 1  ;;  %p164_p8 = scmp.lt.s32.totalorder %s2783_s18, 3 }
   0xc   : > { %p165_p9 = pnand %p2215_p7, %p164_p8 }
   0xd   : > { %p189_p10 = scmp.lt.s32.totalorder (!%p165_p9), %s2841_s19, 1  ;;  %v2665_v0 = vld [vmem:[%s3416_s1 + $0x20] sm:$0xff] (!%p165_p9)   ;;  %vm441_vm0 = vcmask (!%p165_p9), 23552   ;;  %v2785_v29 = vmov (!%p165_p9), 683565275   ;;  %s186_s12 = sand.u32 (!%p165_p9), 1, %s2775_s16  }
   0xe   : > { %168 = sbr.rel (%p165_p9) target bundleno = 924 (0x39c), region = 36  ;;  %2439 = vmatprep.mubr.msk.bf16.mxu1 (!%p165_p9), %vm441_vm0, %v2665_v0  ;;  %v2667_v2 = vld [vmem:[%s3416_s1 + $0x60] sm:$0xff] (!%p165_p9)   ;;  %v2786_v31 = vmov (!%p165_p9), 2475754826   ;;  %v2787_v33 = vmov (!%p165_p9), 2131351028  }
   0xf   : > { %2469 = vmatprep.mubr.msk.bf16.mxu0 (!%p165_p9), %vm441_vm0, %v2667_v2  ;;  %v2788_v35 = vmov (!%p165_p9), 2102212464   ;;  %v2789_v37 = vmov (!%p165_p9), 920167782   ;;  %v2790_v44 = vmov (!%p165_p9), 1326507024  }
  0x10   : > { %s2216_s13 = sshll.u32 (!%p165_p9), %s186_s12, 3  ;;  %s2381_s14 = sshll.u32 (!%p165_p9), %s2841_s19, 7 }
  0x11   : > { %s188_s20 = scalar_lea.vmem (!%p165_p9), [#allocation2], %s2216_s13  ;;  %s3373_s28 = scalar_lea.hbm (!%p165_p9), %s3419_s4, %s2381_s14 }
  0x12   : > { %s2153_s22 = sshll.u32 (!%p165_p9), %s188_s20, 4  ;;  %s2140_s29 = scalar_lea.sflag (!%p165_p9), [#allocation3], %s186_s12  ;;  %s3375_s22 = int_to_ptr.vmem [resolvable:$true] %s2153_s22 }
  0x15   : > { %s190_s27 = scalar_select %p189_p10, %s2841_s19, 1 }
  0x16   : > { %s2794_s19 = smov [#allocation2]  }
  0x17   : > { %s2217_s30 = sshll.u32 %s190_s27, 2  ;;  %s2725_s5 = sshll.u32 %s2794_s19, 4  ;;  %s2726_s5 = int_to_ptr.vmem [resolvable:$false] %s2725_s5 }
  0x18   : > { %s192_s7 = scalar_lea.vmem %s3415_s0, %s2217_s30  ;;  %s2721_s30 = scalar_lea.vmem %s3375_s22, 128 }
  0x19   : > { %v2877_v1 = vld [vmem:[%s192_s7] sm:$0x7]  ;;  %p2722_p11 = scmp.ne.s32.totalorder %s3375_s22, %s2721_s30  ;;  %s2727_s6 = scalar_lea.vmem %s2726_s5, 256 }
  0x1a   : > { %v195_v3 = vand.u32 2147483647, %v2877_v1  ;;  %v198_v4 = vand.u32 2139095040, %v2877_v1  ;;  %v2885_v5 = vmul.f32 2.0, %v2877_v1  ;;  %v2889_v6 = vmul.f32 4.0, %v2877_v1  ;;  %p2728_p0 = scmp.lt.s32.totalorder %s3375_s22, %s2726_s5  ;;  %p2729_p1 = scmp.lt.s32.totalorder %s2727_s6, %s2721_s30 }
  0x1b   : > { %vm197_vm14 = vcmp.lt.s32.totalorder %v2877_v1, 0  ;;  %p2723_p12 = pnand %p2722_p11, %p2858_p5 }
  0x1c   : > { %v199_v7 = vshrl.u32 %v198_v4, 23  ;;  %v202_v8 = vand.u32 8388607, %v195_v3  ;;  %v627_v9 = vand.u32 2147483647, %v2885_v5  ;;  %v630_v10 = vand.u32 2139095040, %v2885_v5  ;;  %p2730_p2 = por %p2729_p1, %p2728_p0 }
  0x1d   : > { %v1074_v14 = vand.u32 2139095040, %v2889_v6  ;;  %v1071_v22 = vand.u32 2147483647, %v2889_v6  ;;  %p2724_p13 = pneg %p2723_p12 }
  0x1e   : > { %v2218_v11 = vadd.s32 4294967169, %v199_v7  ;;  %v631_v12 = vshrl.u32 %v630_v10, 23  ;;  %v634_v13 = vand.u32 8388607, %v627_v9  ;;  %v203_v15 = vor.u32 8388608, %v202_v8 }
  0x1f   : > { %v1075_v19 = vshrl.u32 %v1074_v14, 23  ;;  %p2731_p3 = pnand %p2730_p2, %p2724_p13 }
  0x20   : > { %v205_v16 = vadd.s32 1, %v2218_v11  ;;  %v2250_v17 = vadd.s32 4294967169, %v631_v12  ;;  %v635_v18 = vor.u32 8388608, %v634_v13  ;;  %v2899_v25 = vshll.u32 %v203_v15, 8 }
  0x21   : > { %v2903_v27 = vadd.s32 4294967169, %v1075_v19 }
  0x22   : > { %vm206_vm1 = vcmp.gt.s32.totalorder %v205_v16, 0  ;;  %v637_v21 = vadd.s32 1, %v2250_v17  ;;  %v2901_v26 = vshll.u32 %v635_v18, 8 }
  0x23   : > { %v207_v20 = vsel %vm206_vm1, %v205_v16, 0 }
  0x24   : > { %v208_v23 = vshrl.u32 %v207_v20, 5  ;;  %v209_v24 = vand.u32 31, %v207_v20  ;;  %vm638_vm2 = vcmp.gt.s32.totalorder %v637_v21, 0 }
  0x25   : > { %v639_v49 = vsel %vm638_vm2, %v637_v21, 0 }
  0x26   : > { %v210_v28 = vsub.s32 32, %v209_v24  ;;  %v212_v30 = vshll.u32 %v2785_v29, %v209_v24  ;;  %v215_v32 = vshll.u32 %v2786_v31, %v209_v24  ;;  %v218_v34 = vshll.u32 %v2787_v33, %v209_v24 }
  0x27   : > { %v221_v36 = vshll.u32 %v2788_v35, %v209_v24  ;;  %v224_v38 = vshll.u32 %v2789_v37, %v209_v24  ;;  %vm227_vm3 = vcmp.lt.s32.totalorder %v208_v23, 1  ;;  %vm228_vm4 = vcmp.lt.s32.totalorder %v208_v23, 2 }
  0x28   : > { %v211_v39 = vshrl.u32 %v2785_v29, %v210_v28  ;;  %v213_v40 = vshrl.u32 %v2786_v31, %v210_v28  ;;  %v216_v41 = vshrl.u32 %v2787_v33, %v210_v28  ;;  %v219_v42 = vshrl.u32 %v2788_v35, %v210_v28 }
  0x29   : > { %v222_v43 = vshrl.u32 %v2789_v37, %v210_v28  ;;  %v225_v45 = vshrl.u32 %v2790_v44, %v210_v28  ;;  %vm229_vm5 = vcmp.lt.s32.totalorder %v208_v23, 3  ;;  %vm230_vm6 = vcmp.lt.s32.totalorder %v208_v23, 4 }
  0x2a   : > { %v214_v46 = vor.u32 %v213_v40, %v212_v30  ;;  %v217_v47 = vor.u32 %v216_v41, %v215_v32  ;;  %v220_v48 = vor.u32 %v219_v42, %v218_v34  ;;  %v640_v52 = vshrl.u32 %v639_v49, 5 }
  0x2b   : > { %v223_v50 = vor.u32 %v222_v43, %v221_v36  ;;  %v226_v51 = vor.u32 %v225_v45, %v224_v38  ;;  %v641_v53 = vand.u32 31, %v639_v49  ;;  %v1081_v34 = vadd.s32 1, %v2903_v27 }
  0x2c   : > { %v231_v54 = vsel %vm227_vm3, %v211_v39, %v214_v46  ;;  %v232_v55 = vsel %vm230_vm6, %v220_v48, 2102212464  ;;  %v235_v56 = vsel %vm227_vm3, %v214_v46, %v217_v47  ;;  %v239_v57 = vsel %vm227_vm3, %v217_v47, %v220_v48 }
  0x2d   : > { %v233_v58 = vsel %vm229_vm5, %v217_v47, %v232_v55  ;;  %v236_v59 = vsel %vm230_vm6, %v223_v50, 920167782  ;;  %v240_v60 = vsel %vm230_vm6, %v226_v51, 1326507024  ;;  %v642_v61 = vsub.s32 32, %v641_v53 }
  0x2e   : > { %v234_v62 = vsel %vm228_vm4, %v231_v54, %v233_v58  ;;  %v237_v63 = vsel %vm229_vm5, %v220_v48, %v236_v59  ;;  %v241_v0 = vsel %vm229_vm5, %v223_v50, %v240_v60  ;;  %v644_v2 = vshll.u32 %v2785_v29, %v641_v53 }
  0x2f   : > { %v238_v4 = vsel %vm228_vm4, %v235_v56, %v237_v63  ;;  %v242_v7 = vsel %vm228_vm4, %v239_v57, %v241_v0  ;;  %v250_v8 = vmul.u32 %v2899_v25, %v234_v62  ;;  %v643_v10 = vshrl.u32 %v2785_v29, %v642_v61 }
  0x30   : > { %v2930_v11 = vmul.u32.u64.low %v2899_v25, %v242_v7  ;;  %v2931_v12 = vmul.u32.u64.high %v2899_v25, %v242_v7, %v2930_v11  ;;  %v2934_v13 = vmul.u32.u64.low %v2899_v25, %v238_v4  ;;  %v2935_v14 = vmul.u32.u64.high %v2899_v25, %v238_v4, %v2934_v13 }
  0x31   : > { %v645_v15 = vshrl.u32 %v2786_v31, %v642_v61  ;;  %v647_v16 = vshll.u32 %v2786_v31, %v641_v53  ;;  %v648_v17 = vshrl.u32 %v2787_v33, %v642_v61  ;;  %v650_v18 = vshll.u32 %v2787_v33, %v641_v53 }
  0x32   : > { %v651_v19 = vshrl.u32 %v2788_v35, %v642_v61  ;;  %v653_v20 = vshll.u32 %v2788_v35, %v641_v53  ;;  %v654_v21 = vshrl.u32 %v2789_v37, %v642_v61  ;;  %v656_v23 = vshll.u32 %v2789_v37, %v641_v53 }
  0x33   : > { %v646_v24 = vor.u32 %v645_v15, %v644_v2  ;;  %v649_v25 = vor.u32 %v648_v17, %v647_v16  ;;  %v657_v28 = vshrl.u32 %v2790_v44, %v642_v61  ;;  %vm659_vm7 = vcmp.lt.s32.totalorder %v640_v52, 1 }
  0x34   : > { %vm252_vm8 = vc.u32 %v2931_v12, %v2934_v13  ;;  %v253_v30 = vadd.s32 1, %v2935_v14  ;;  %v652_v32 = vor.u32 %v651_v19, %v650_v18  ;;  %v655_v36 = vor.u32 %v654_v21, %v653_v20 }
  0x35   : > { %v658_v38 = vor.u32 %v657_v28, %v656_v23  ;;  %vm660_vm9 = vcmp.lt.s32.totalorder %v640_v52, 2  ;;  %vm661_vm10 = vcmp.lt.s32.totalorder %v640_v52, 3  ;;  %vm662_vm11 = vcmp.lt.s32.totalorder %v640_v52, 4 }
  0x36   : > { %v254_v39 = vsel %vm252_vm8, %v253_v30, %v2935_v14  ;;  %v663_v40 = vsel %vm659_vm7, %v643_v10, %v646_v24  ;;  %v667_v41 = vsel %vm659_vm7, %v646_v24, %v649_v25  ;;  %v664_v43 = vsel %vm662_vm11, %v652_v32, 2102212464 }
  0x37   : > { %v255_v42 = vadd.s32 %v254_v39, %v250_v8  ;;  %v668_v45 = vsel %vm662_vm11, %v655_v36, 920167782  ;;  %v671_v46 = vsel %vm659_vm7, %v649_v25, %v652_v32  ;;  %v665_v47 = vsel %vm661_vm10, %v649_v25, %v664_v43 }
  0x38   : > { %v669_v48 = vsel %vm661_vm10, %v652_v32, %v668_v45  ;;  %v672_v49 = vsel %vm662_vm11, %v658_v38, 1326507024  ;;  %vm1082_vm12 = vcmp.gt.s32.totalorder %v1081_v34, 0  ;;  %v666_v53 = vsel %vm660_vm9, %v663_v40, %v665_v47 }
  0x39   : > { %v256_v27 = vadd.s32 536870912, %v255_v42  ;;  %v670_v50 = vsel %vm660_vm9, %v667_v41, %v669_v48  ;;  %v673_v51 = vsel %vm661_vm10, %v655_v36, %v672_v49  ;;  %v1083_v60 = vsel %vm1082_vm12, %v1081_v34, 0 }
  0x3a   : > { %v674_v54 = vsel %vm660_vm9, %v671_v46, %v673_v51  ;;  %v2959_v55 = vmul.u32.u64.low %v2901_v26, %v670_v50  ;;  %v2960_v56 = vmul.u32.u64.high %v2901_v26, %v670_v50, %v2959_v55  ;;  %v1078_v61 = vand.u32 8388607, %v1071_v22 }
  0x3b   : > { %v2963_v57 = vshrl.u32 %v256_v27, 30  ;;  %v2966_v58 = vmul.u32.u64.low %v2901_v26, %v674_v54  ;;  %v2967_v59 = vmul.u32.u64.high %v2901_v26, %v674_v54, %v2966_v58  ;;  %v1085_v62 = vand.u32 31, %v1083_v60 }
  0x3c   : > { %v682_v52 = vmul.u32 %v2901_v26, %v666_v53  ;;  %v685_v0 = vadd.s32 1, %v2960_v56  ;;  %v1079_v14 = vor.u32 8388608, %v1078_v61  ;;  %v251_v30 = vadd.s32 %v2934_v13, %v2931_v12 }
  0x3d   : > { %v258_v63 = vshll.u32 %v2963_v57, 30  ;;  %vm684_vm13 = vc.u32 %v2967_v59, %v2959_v55  ;;  %v1086_v7 = vsub.s32 32, %v1085_v62  ;;  %v1088_v16 = vshll.u32 %v2785_v29, %v1085_v62 }
  0x3e   : > { %v686_v4 = vsel %vm684_vm13, %v685_v0, %v2960_v56  ;;  %v1091_v26 = vshll.u32 %v2786_v31, %v1085_v62  ;;  %v1094_v20 = vshll.u32 %v2787_v33, %v1085_v62  ;;  %v1097_v25 = vshll.u32 %v2788_v35, %v1085_v62 }
  0x3f   : > { %v259_v2 = vsub.s32 %v255_v42, %v258_v63  ;;  %v687_v10 = vadd.s32 %v686_v4, %v682_v52  ;;  %v1089_v17 = vshrl.u32 %v2786_v31, %v1086_v7  ;;  %v1092_v19 = vshrl.u32 %v2787_v33, %v1086_v7 }
  0x40   : > { %v1095_v21 = vshrl.u32 %v2788_v35, %v1086_v7  ;;  %v1098_v28 = vshrl.u32 %v2789_v37, %v1086_v7  ;;  %v1084_v34 = vshrl.u32 %v1083_v60, 5  ;;  %v2990_v36 = vshll.u32 %v1079_v14, 8 }
  0x41   : > { %v261_v8 = vsub.s32 0, %v259_v2  ;;  %v688_v15 = vadd.s32 536870912, %v687_v10  ;;  %v1090_v38 = vor.u32 %v1089_v17, %v1088_v16  ;;  %v1093_v39 = vor.u32 %v1092_v19, %v1091_v26 }
  0x42   : > { %v1096_v40 = vor.u32 %v1095_v21, %v1094_v20  ;;  %v1100_v43 = vshll.u32 %v2789_v37, %v1085_v62  ;;  %v1101_v45 = vshrl.u32 %v2790_v44, %v1086_v7  ;;  %v1099_v47 = vor.u32 %v1098_v28, %v1097_v25 }
  0x43   : > { %v2219_v11 = vmin.u32 %v261_v8, %v259_v2  ;;  %v2983_v23 = vshrl.u32 %v688_v15, 30  ;;  %v1087_v49 = vshrl.u32 %v2785_v29, %v1086_v7  ;;  %vm1103_vm1 = vcmp.lt.s32.totalorder %v1084_v34, 1 }
  0x44   : > { %vm1106_vm2 = vcmp.lt.s32.totalorder %v1084_v34, 4  ;;  %v281_v51 = vsub.s32 4, %v2963_v57  ;;  %v1102_v56 = vor.u32 %v1101_v45, %v1100_v43  ;;  %vm1104_vm3 = vcmp.lt.s32.totalorder %v1084_v34, 2 }
  0x45   : > { %v263_v18 = vclz %v2219_v11  ;;  %v690_v32 = vshll.u32 %v2983_v23, 30  ;;  %v1108_v53 = vsel %vm1106_vm2, %v1096_v40, 2102212464  ;;  %vm1105_vm4 = vcmp.lt.s32.totalorder %v1084_v34, 3 }
  0x46   : > { %vm3004_vm5 = vcmp.le.f32.partialorder %v195_v3, 0.7853982  ;;  %v1111_v62 = vsel %vm1103_vm1, %v1090_v38, %v1093_v39  ;;  %v1112_v63 = vsel %vm1106_vm2, %v1099_v47, 920167782  ;;  %v1107_v0 = vsel %vm1103_vm1, %v1087_v49, %v1090_v38 }
  0x47   : > { %v2220_v24 = vadd.s32 4294967294, %v263_v18  ;;  %v2993_v42 = vsub.s32 %v687_v10, %v690_v32  ;;  %v3013_v4 = vmul.f32 8.0, %v2877_v1  ;;  %v1113_v3 = vsel %vm1105_vm4, %v1096_v40, %v1112_v63 }
  0x48   : > { %v1115_v10 = vsel %vm1103_vm1, %v1093_v39, %v1096_v40  ;;  %v282_v11 = vsel %vm197_vm14, %v281_v51, %v2963_v57  ;;  %v1114_v15 = vsel %vm1104_vm3, %v1111_v62, %v1113_v3  ;;  %v1116_v16 = vsel %vm1106_vm2, %v1102_v56, 1326507024 }
  0x49   : > { %vm2221_vm15 = vcmp.lt.s32.totalorder %v2220_v24, 0  ;;  %v693_v48 = vsub.s32 0, %v2993_v42  ;;  %vm454_vm6 = vcmask 1040384   ;;  %v1117_v26 = vsel %vm1105_vm4, %v1099_v47, %v1116_v16 }
  0x4a   : > { %v266_v41 = vsel %vm2221_vm15, 0, %v2220_v24  ;;  %v3024_v18 = vmul.u32.u64.low %v2990_v36, %v1114_v15  ;;  %v3025_v19 = vmul.u32.u64.high %v2990_v36, %v1114_v15, %v3024_v18  ;;  %v683_v20 = vadd.s32 %v2959_v55, %v2967_v59 }
  0x4b   : > { %v267_v46 = vsub.s32 32, %v266_v41  ;;  %v268_v12 = vshll.u32 %v259_v2, %v266_v41  ;;  %v271_v13 = vsub.s32 4294967266, %v266_v41  ;;  %v2251_v54 = vmin.u32 %v693_v48, %v2993_v42 }
  0x4c   : > { %v1109_v2 = vsel %vm1105_vm4, %v1093_v39, %v1108_v53  ;;  %v1118_v21 = vsel %vm1104_vm3, %v1115_v10, %v1117_v26  ;;  %vm629_vm8 = vcmp.lt.s32.totalorder %v2885_v5, 0  ;;  %v1129_v59 = vadd.s32 1, %v3025_v19 }
  0x4d   : > { %v269_v27 = vshrl.u32 %v251_v30, %v267_v46  ;;  %v272_v50 = vadd.s32 127, %v271_v13  ;;  %v695_v52 = vclz %v2251_v54  ;;  %v1110_v57 = vsel %vm1104_vm3, %v1107_v0, %v1109_v2 }
  0x4e   : > { %v3033_v28 = vmul.u32.u64.low %v2990_v36, %v1118_v21  ;;  %v3034_v30 = vmul.u32.u64.high %v2990_v36, %v1118_v21, %v3033_v28  ;;  %v1126_v55 = vmul.u32 %v2990_v36, %v1110_v57  ;;  %v1518_v34 = vand.u32 2139095040, %v3013_v4 }
  0x4f   : > { %v270_v60 = vor.u32 %v269_v27, %v268_v12  ;;  %v273_v61 = vshll.u32 %v272_v50, 23  ;;  %v2252_v14 = vadd.s32 4294967294, %v695_v52  ;;  %v284_v41 = vsel %vm3004_vm5, 0, %v282_v11 }
  0x50   : > { %v713_v46 = vsub.s32 4, %v2983_v23  ;;  %vm1128_vm9 = vc.u32 %v3034_v30, %v3024_v18  ;;  %v1519_v36 = vshrl.u32 %v1518_v34, 23  ;;  %v288_v27 = vadd.s32 3, %v284_v41 }
  0x51   : > { %v274_v7 = vor.u32 4788187, %v273_v61  ;;  %v277_v8 = vcvt.s32.f32 %v270_v60  ;;  %vm2253_vm7 = vcmp.lt.s32.totalorder %v2252_v14, 0  ;;  %v1130_v49 = vsel %vm1128_vm9, %v1129_v59, %v3025_v19 }
  0x52   : > { %v698_v25 = vsel %vm2253_vm7, 0, %v2252_v14  ;;  %v1131_v50 = vadd.s32 %v1130_v49, %v1126_v55  ;;  %v2330_v51 = vadd.s32 4294967169, %v1519_v36  ;;  %v714_v56 = vsel %vm629_vm8, %v713_v46, %v2983_v23 }
  0x53   : > { %v275_v17 = vand.u32 2147483647, %v274_v7  ;;  %v699_v32 = vsub.s32 32, %v698_v25  ;;  %v700_v38 = vshll.u32 %v2993_v42, %v698_v25  ;;  %v703_v39 = vsub.s32 4294967266, %v698_v25 }
  0x54   : > { %v1515_v42 = vand.u32 2147483647, %v3013_v4  ;;  %vm455_vm10 = vcmask 1041408   ;;  %vm3058_vm11 = vcmp.le.f32.partialorder %v627_v9, 0.7853982  ;;  %v1132_v60 = vadd.s32 536870912, %v1131_v50 }
  0x55   : > { %v278_v24 = vmul.f32 %v277_v8, %v275_v17  ;;  %v701_v43 = vshrl.u32 %v683_v20, %v699_v32  ;;  %v704_v45 = vadd.s32 127, %v703_v39  ;;  %v1525_v61 = vadd.s32 1, %v2330_v51 }
  0x56   : > { %v392_v62 = vand.u32 3, %v284_v41  ;;  %v2791_v63 = vmov 65535   ;;  %v1522_v2 = vand.u32 8388607, %v1515_v42  ;;  %v289_v7 = vand.u32 3, %v288_v27 }
  0x57   : > { %v279_v40 = vxor.u32 2147483648, %v278_v24  ;;  %v702_v47 = vor.u32 %v701_v43, %v700_v38  ;;  %v705_v48 = vshll.u32 %v704_v45, 23  ;;  %v456_v52 = vsel %vm454_vm6, 4294967295, %v2791_v63 }
  0x58   : > { %v716_v23 = vsel %vm3058_vm11, 0, %v714_v56  ;;  %v3067_v8 = vshrl.u32 %v1132_v60, 30  ;;  %vm1526_vm12 = vcmp.gt.s32.totalorder %v1525_v61, 0  ;;  %v3070_v11 = vsel %vm455_vm10, %v456_v52, 0 }
  0x59   : > { %v280_v12 = vsel %vm197_vm14, %v279_v40, %v278_v24  ;;  %v706_v53 = vor.u32 4788187, %v705_v48  ;;  %v709_v54 = vcvt.s32.f32 %v702_v47  ;;  %v720_v3 = vadd.s32 3, %v716_v23 }
  0x5a   : > { %v283_v13 = vsel %vm3004_vm5, %v2877_v1, %v280_v12  ;;  %v1527_v10 = vsel %vm1526_vm12, %v1525_v61, 0  ;;  %v1134_v14 = vshll.u32 %v3067_v8, 30  ;;  %vm287_vm13 = vweird.f32 %v2877_v1 }
  0x5b   : > { %2701 = vcosq.f32 %v283_v13  ;;  %v707_v0 = vand.u32 2147483647, %v706_v53  ;;  %v3073_v15 = vand.u32 31, %v1527_v10  ;;  %vm393_vm14 = vcmp.lt.s32.totalorder %v392_v62, 2 }
  0x5c   : > { %2703 = vsinq.f32 %v283_v13  ;;  %v1523_v17 = vor.u32 8388608, %v1522_v2  ;;  %vm290_vm15 = vcmp.lt.s32.totalorder %v289_v7, 2  ;;  %vm394_vm1 = vcmp.eq.s32.totalorder %v392_v62, 0 }
  0x5d   : > { %v710_v9 = vmul.f32 %v709_v54, %v707_v0  ;;  %vm397_vm2 = vcmp.eq.s32.totalorder %v392_v62, 2  ;;  %v3076_v26 = vsub.s32 %v1131_v50, %v1134_v14  ;;  %v3080_v20 = vand.u32 3, %v720_v3 }
  0x5e   : > { %v3082_v57 = vand.u32 3, %v716_v23  ;;  %v1530_v21 = vsub.s32 32, %v3073_v15  ;;  %vm291_vm3 = vcmp.eq.s32.totalorder %v289_v7, 0  ;;  %vm294_vm4 = vcmp.eq.s32.totalorder %v289_v7, 2 }
  0x5f   : > { %v711_v16 = vxor.u32 2147483648, %v710_v9  ;;  %v1137_v28 = vsub.s32 0, %v3076_v26  ;;  %v1127_v39 = vadd.s32 %v3024_v18, %v3034_v30  ;;  %v3091_v40 = vshll.u32 %v1523_v17, 8 }
  0x60   : > { %v1157_v34 = vsub.s32 4, %v3067_v8  ;;  %vm726_vm5 = vcmp.eq.s32.totalorder %v3080_v20, 2  ;;  %vm829_vm6 = vcmp.eq.s32.totalorder %v3082_v57, 2  ;;  %v1532_v45 = vshll.u32 %v2785_v29, %v3073_v15 }
  0x61   : > { %v712_v19 = vsel %vm629_vm8, %v711_v16, %v710_v9  ;;  %v2291_v59 = vmin.u32 %v1137_v28, %v3076_v26  ;;  %v1533_v18 = vshrl.u32 %v2786_v31, %v1530_v21  ;;  %vm723_vm7 = vcmp.eq.s32.totalorder %v3080_v20, 0  ;;  %v2666_v9 = vld [vmem:[%s3416_s1 + $0x28] sm:$0xff]  }
  0x62   : > { %v715_v25 = vsel %vm3058_vm11, %v2885_v5, %v712_v19  ;;  %vm826_vm8 = vcmp.eq.s32.totalorder %v3082_v57, 0  ;;  %v3105_v36 = vshrl.u32 %v1527_v10, 5  ;;  %vm722_vm9 = vcmp.lt.s32.totalorder %v3080_v20, 2  ;;  %v2669_v19 = vld [vmem:[%s3416_s1 + $0x30] sm:$0xff]  }
  0x63   : > { %2705 = vcosq.f32 %v715_v25  ;;  %v1139_v12 = vclz %v2291_v59  ;;  %vm825_vm10 = vcmp.lt.s32.totalorder %v3082_v57, 2  ;;  %v1535_v48 = vshll.u32 %v2786_v31, %v3073_v15 }
  0x64   : > { %2707 = vsinq.f32 %v715_v25  ;;  %v1538_v49 = vshll.u32 %v2787_v33, %v3073_v15  ;;  %vm719_vm11 = vweird.f32 %v2885_v5  ;;  %v1531_v53 = vshrl.u32 %v2785_v29, %v1530_v21 }
  0x65   : > { %v2702_v24 = vpop.eup %2701  ;;  %v2292_v51 = vadd.s32 4294967294, %v1139_v12  ;;  %v1534_v58 = vor.u32 %v1533_v18, %v1532_v45  ;;  %v1536_v60 = vshrl.u32 %v2787_v33, %v1530_v21  ;;  %v1539_v31 = vshrl.u32 %v2788_v35, %v1530_v21 }
  0x66   : > { %v2704_v32 = vpop.eup %2703  ;;  %v295_v38 = vxor.u32 2147483648, %v2702_v24  ;;  %v1541_v61 = vshll.u32 %v2788_v35, %v3073_v15  ;;  %v1542_v62 = vshrl.u32 %v2789_v37, %v1530_v21  ;;  %v1544_v3 = vshll.u32 %v2789_v37, %v3073_v15 }
  0x67   : > { %v292_v55 = vxor.u32 2147483648, %v2704_v32  ;;  %vm2293_vm12 = vcmp.lt.s32.totalorder %v2292_v51, 0  ;;  %v1537_v0 = vor.u32 %v1536_v60, %v1535_v48  ;;  %v1540_v23 = vor.u32 %v1539_v31, %v1538_v49 }
  0x68   : > { %v296_v41 = vsel %vm294_vm4, %v295_v38, %v2704_v32  ;;  %v399_v43 = vsel %vm397_vm2, %v295_v38, %v2704_v32  ;;  %v1142_v63 = vsel %vm2293_vm12, 0, %v2292_v51  ;;  %v1543_v35 = vor.u32 %v1542_v62, %v1541_v61  ;;  %v2673_v51 = vld [vmem:[%s3416_s1] sm:$0xff]  }
  0x69   : > { %v293_v30 = vsel %vm291_vm3, %v2702_v24, %v292_v55  ;;  %v396_v46 = vsel %vm394_vm1, %v2702_v24, %v292_v55  ;;  %v1143_v29 = vsub.s32 32, %v1142_v63  ;;  %v1144_v2 = vshll.u32 %v3076_v26, %v1142_v63 }
  0x6a   : > { %v297_v13 = vsel %vm290_vm15, %v293_v30, %v296_v41  ;;  %v400_v47 = vsel %vm393_vm14, %v396_v46, %v399_v43  ;;  %v1147_v7 = vsub.s32 4294967266, %v1142_v63  ;;  %v1545_v10 = vshrl.u32 %v2790_v44, %v1530_v21 }
  0x6b   : > { %v298_v27 = vsel %vm287_vm13, nan, %v297_v13  ;;  %v401_v50 = vsel %vm287_vm13, nan, %v400_v47  ;;  %vm1547_vm13 = vcmp.lt.s32.totalorder %v3105_v36, 1  ;;  %v1145_v17 = vshrl.u32 %v1127_v39, %v1143_v29  ;;  %v2670_v47 = vld [vmem:[%s3416_s1 + $0x38] sm:$0xff]  }
  0x6c   : > { %v420_v54 = vpack.c.bf16 %v401_v50, %v401_v50  ;;  %v410_v56 = vpack.c.bf16 %v298_v27, %v298_v27  ;;  %v1148_v26 = vadd.s32 127, %v1147_v7  ;;  %vm1548_vm14 = vcmp.lt.s32.totalorder %v3105_v36, 2 }
  0x6d   : > { %v2706_v33 = vpop.eup %2705  ;;  %v1546_v25 = vor.u32 %v1545_v10, %v1544_v3  ;;  %vm1549_vm15 = vcmp.lt.s32.totalorder %v3105_v36, 3  ;;  %vm1550_vm1 = vcmp.lt.s32.totalorder %v3105_v36, 4  ;;  %v1146_v15 = vor.u32 %v1145_v17, %v1144_v2  ;;  %v2672_v10 = vld [vmem:[%s3416_s1 + $0x78] sm:$0xff]  }
  0x6e   : > { %v459_v1 = vand.u32 %v3070_v11, %v420_v54  ;;  %v559_v52 = vand.u32 %v3070_v11, %v410_v56  ;;  %v2708_v14 = vpop.eup %2707  ;;  %v727_v16 = vxor.u32 2147483648, %v2706_v33  ;;  %v1149_v21 = vshll.u32 %v1148_v26, 23 }
  0x6f   : > { %v724_v24 = vxor.u32 2147483648, %v2708_v14  ;;  %v1551_v38 = vsel %vm1547_vm13, %v1531_v53, %v1534_v58  ;;  %v1552_v39 = vsel %vm1550_vm1, %v1540_v23, 2102212464  ;;  %v1153_v43 = vcvt.s32.f32 %v1146_v15 }
  0x70   : > { %2437 = vmatprep.subr.bf16.mxu1 %v459_v1  ;;  %v728_v37 = vsel %vm726_vm5, %v727_v16, %v2708_v14  ;;  %v831_v44 = vsel %vm829_vm6, %v727_v16, %v2708_v14  ;;  %v1150_v41 = vor.u32 4788187, %v1149_v21  ;;  %v1553_v30 = vsel %vm1549_vm15, %v1537_v0, %v1552_v39  ;;  %v2675_v14 = vld [vmem:[%s3416_s1 + $0x80] sm:$0xff]  }
  0x71   : > { %2438 = vmatpush3.bf16.msra.mxu1 %v459_v1  ;;  %v725_v28 = vsel %vm723_vm7, %v2706_v33, %v724_v24  ;;  %v828_v32 = vsel %vm826_vm8, %v2706_v33, %v724_v24  ;;  %v1555_v20 = vsel %vm1547_vm13, %v1534_v58, %v1537_v0  ;;  %v1554_v13 = vsel %vm1548_vm14, %v1551_v38, %v1553_v30  ;;  %v2678_v24 = vld [vmem:[%s3416_s1 + $0x18] sm:$0xff]  }
  0x72   : > { %2447 = vmatprep.subr.bf16.mxu1 %v559_v52  ;;  %v729_v55 = vsel %vm722_vm9, %v725_v28, %v728_v37  ;;  %v832_v59 = vsel %vm825_vm10, %v828_v32, %v831_v44  ;;  %v1151_v57 = vand.u32 2147483647, %v1150_v41  ;;  %vm1073_vm2 = vcmp.lt.s32.totalorder %v2889_v6, 0  ;;  %v2681_v44 = vld [vmem:[%s3416_s1 + $0x40] sm:$0xff]  }
  0x73   : > { %v730_v45 = vsel %vm719_vm11, nan, %v729_v55  ;;  %v833_v18 = vsel %vm719_vm11, nan, %v832_v59  ;;  %v1556_v5 = vsel %vm1550_vm1, %v1543_v35, 920167782  ;;  %v1559_v48 = vsel %vm1547_vm13, %v1537_v0, %v1540_v23 }
  0x74   : > { %2440 = vmatmul.mubr.msk.bf16.vlgmr.msra.gmra.mrb[0].mxu1 %vm441_vm0, %v2666_v9  ;;  %v961_v46 = vpack.c.bf16 %v833_v18, %v833_v18  ;;  %v843_v12 = vpack.c.bf16 %v730_v45, %v730_v45  ;;  %v1560_v49 = vsel %vm1550_vm1, %v1546_v25, 1326507024  ;;  %v1154_v50 = vmul.f32 %v1153_v43, %v1151_v57 }
  0x75   : > { %2443 = vmatprep.mubr.msk.bf16.mxu1 %vm441_vm0, %v2669_v19  ;;  %2448 = vmatpush3.bf16.msra.mxu1 %v559_v52  ;;  %v1557_v54 = vsel %vm1549_vm15, %v1540_v23, %v1556_v5  ;;  %vm3189_vm3 = vcmp.le.f32.partialorder %v1071_v22, 0.7853982  ;;  %v1158_v58 = vsel %vm1073_vm2, %v1157_v34, %v3067_v8  ;;  %v1561_v31 = vsel %vm1549_vm15, %v1543_v35, %v1560_v49  ;;  %v2668_v22 = vld [vmem:[%s3416_s1 + $0x68] sm:$0xff]   ;;  %v2671_v8 = vld [vmem:[%s3416_s1 + $0x70] sm:$0xff]  }
  0x76   : > { %v995_v27 = vand.u32 %v961_v46, %v3070_v11  ;;  %v877_v53 = vand.u32 %v843_v12, %v3070_v11  ;;  %v1558_v60 = vsel %vm1548_vm14, %v1555_v20, %v1557_v54  ;;  %v1155_v61 = vxor.u32 2147483648, %v1154_v50  ;;  %v2674_v23 = vld [vmem:[%s3416_s1 + $0x8] sm:$0xff]  }
  0x77   : > { %v1562_v62 = vsel %vm1548_vm14, %v1559_v48, %v1561_v31  ;;  %v3208_v1 = vmul.u32.u64.low %v3091_v40, %v1558_v60  ;;  %v3209_v63 = vmul.u32.u64.high %v3091_v40, %v1558_v60, %v3208_v1  ;;  %v1160_v29 = vsel %vm3189_vm3, 0, %v1158_v58  ;;  %v2676_v49 = vld [vmem:[%s3416_s1 + $0x88] sm:$0xff]   ;;  %v2686_v60 = vld [vmem:[%s3416_s1 + $0x58] sm:$0xff]  }
  0x78   : > { %2467 = vmatprep.subr.bf16.mxu0 %v995_v27  ;;  %2457 = vmatprep.subr.bf16.mxu1 %v877_v53  ;;  %v3216_v34 = vmul.u32.u64.low %v3091_v40, %v1562_v62  ;;  %v3217_v52 = vmul.u32.u64.high %v3091_v40, %v1562_v62, %v3216_v34  ;;  %v1156_v0 = vsel %vm1073_vm2, %v1155_v61, %v1154_v50  ;;  %v1570_v2 = vmul.u32 %v3091_v40, %v1554_v13  ;;  %v2677_v40 = vld [vmem:[%s3416_s1 + $0x10] sm:$0xff]   ;;  %v2680_v61 = vld [vmem:[%s3416_s1 + $0x98] sm:$0xff]  }
  0x79   : > { %2468 = vmatpush3.bf16.msra.mxu0 %v995_v27  ;;  %v1159_v36 = vsel %vm3189_vm3, %v2889_v6, %v1156_v0  ;;  %v1573_v7 = vadd.s32 1, %v3209_v63  ;;  %v1164_v9 = vadd.s32 3, %v1160_v29  ;;  %v1268_v26 = vand.u32 3, %v1160_v29  ;;  %v2685_v13 = vld [vmem:[%s3416_s1 + $0x50] sm:$0xff]   ;;  %v2684_v29 = vld [vmem:[%s3416_s1 + $0xa8] sm:$0xff]  }
  0x7a   : > { %2709 = vcosq.f32 %v1159_v36  ;;  %v3235_v33 = vadd.s32 %v3208_v1, %v3217_v52  ;;  %vm1572_vm4 = vc.u32 %v3217_v52, %v3208_v1  ;;  %vm1163_vm11 = vweird.f32 %v2889_v6  ;;  %v2682_v6 = vld [vmem:[%s3416_s1 + $0x48] sm:$0xff]   ;;  %v2679_v27 = vld [vmem:[%s3416_s1 + $0x90] sm:$0xff]  }
  0x7b   : > { %2711 = vsinq.f32 %v1159_v36  ;;  %v1574_v35 = vsel %vm1572_vm4, %v1573_v7, %v3209_v63  ;;  %v1165_v17 = vand.u32 3, %v1164_v9  ;;  %vm1273_vm6 = vcmp.eq.s32.totalorder %v1268_v26, 2  ;;  %v2683_v63 = vld [vmem:[%s3416_s1 + $0xa0] sm:$0xff]  }
  0x7c   : > { %2444 = vmatmul.mubr.msk.bf16.gmra.mrb[4].mxu1 %vm441_vm0, %v2670_v47  ;;  %2470 = vmatmul.mubr.msk.bf16.vlgmr.msra.gmra.mrb[0].mxu0 %vm441_vm0, %v2668_v22  ;;  %v1575_v3 = vadd.s32 %v1574_v35, %v1570_v2  ;;  %vm1270_vm8 = vcmp.eq.s32.totalorder %v1268_v26, 0  ;;  %vm1269_vm10 = vcmp.lt.s32.totalorder %v1268_v26, 2  ;;  %vm1517_vm13 = vcmp.lt.s32.totalorder %v3013_v4, 0 }
  0x7d   : > { %2449 = vmatprep.mubr.msk.bf16.mxu1 %vm441_vm0, %v2673_v51  ;;  %2473 = vmatprep.mubr.msk.bf16.mxu0 %vm441_vm0, %v2671_v8  ;;  %vm1170_vm5 = vcmp.eq.s32.totalorder %v1165_v17, 2  ;;  %vm1167_vm7 = vcmp.eq.s32.totalorder %v1165_v17, 0  ;;  %vm1166_vm9 = vcmp.lt.s32.totalorder %v1165_v17, 2  ;;  %vm1516_vm14 = vcmp.le.f32.partialorder %v1515_v42, 0.7853982 }
  0x7e   : > { %v1576_v16 = vadd.s32 536870912, %v1575_v3 }
  0x80   : > { %v3250_v19 = vshrl.u32 %v1576_v16, 30 }
  0x82   : > { %v1578_v25 = vshll.u32 %v3250_v19, 30  ;;  %v1601_v34 = vsub.s32 4, %v3250_v19 }
  0x84   : > { %2450 = vmatmul.mubr.msk.bf16.vlgmr.msra.gmra.mrb[0].mxu1 %vm441_vm0, %v2674_v23  ;;  %2474 = vmatmul.mubr.msk.bf16.gmra.mrb[4].mxu0 %vm441_vm0, %v2672_v10  ;;  %v2710_v37 = vpop.eup %2709  ;;  %v1579_v28 = vsub.s32 %v1575_v3, %v1578_v25  ;;  %v1602_v36 = vsel %vm1517_vm13, %v1601_v34, %v3250_v19  ;;  %v2689_v3 = vld [vmem:[%s3416_s1 + $0xc0] sm:$0xff]  }
  0x85   : > { %2453 = vmatprep.mubr.msk.bf16.mxu1 %vm441_vm0, %v2677_v40  ;;  %2458 = vmatpush3.bf16.msra.mxu1 %v877_v53  ;;  %v2712_v15 = vpop.eup %2711  ;;  %v1171_v21 = vxor.u32 2147483648, %v2710_v37  ;;  %v1604_v23 = vsel %vm1516_vm14, 0, %v1602_v36  ;;  %v2688_v40 = vld [vmem:[%s3416_s1 + $0xb8] sm:$0xff]  }
  0x86   : > { %2479 = vmatprep.mubr.msk.bf16.mxu0 %vm441_vm0, %v2675_v14  ;;  %v1168_v32 = vxor.u32 2147483648, %v2712_v15  ;;  %v1581_v55 = vsub.s32 0, %v1579_v28  ;;  %v1608_v42 = vadd.s32 3, %v1604_v23  ;;  %v1712_v35 = vand.u32 3, %v1604_v23 }
  0x87   : > { %v1172_v38 = vsel %vm1170_vm5, %v1171_v21, %v2712_v15  ;;  %v1275_v39 = vsel %vm1273_vm6, %v1171_v21, %v2712_v15  ;;  %vm1607_vm6 = vweird.f32 %v3013_v4 }
  0x88   : > { %v1169_v59 = vsel %vm1167_vm7, %v2710_v37, %v1168_v32  ;;  %v1272_v41 = vsel %vm1270_vm8, %v2710_v37, %v1168_v32  ;;  %v2331_v18 = vmin.u32 %v1581_v55, %v1579_v28  ;;  %v1609_v9 = vand.u32 3, %v1608_v42  ;;  %v2690_v55 = vld [vmem:[%s3416_s1 + $0xc8] sm:$0xff]  }
  0x89   : > { %v1173_v43 = vsel %vm1166_vm9, %v1169_v59, %v1172_v38  ;;  %v1276_v45 = vsel %vm1269_vm10, %v1272_v41, %v1275_v39  ;;  %vm1717_vm1 = vcmp.eq.s32.totalorder %v1712_v35, 2  ;;  %vm1714_vm3 = vcmp.eq.s32.totalorder %v1712_v35, 0  ;;  %v2693_v59 = vld [vmem:[%s3416_s1 + $0xe0] sm:$0xff]   ;;  %v2694_v41 = vld [vmem:[%s3416_s1 + $0xe8] sm:$0xff]  }
  0x8a   : > { %v1174_v30 = vsel %vm1163_vm11, nan, %v1173_v43  ;;  %v1277_v20 = vsel %vm1163_vm11, nan, %v1276_v45  ;;  %v1583_v12 = vclz %v2331_v18  ;;  %vm1614_vm15 = vcmp.eq.s32.totalorder %v1609_v9, 2  ;;  %v2695_v43 = vld [vmem:[%s3416_s1 + $0xf0] sm:$0xff]   ;;  %v2696_v45 = vld [vmem:[%s3416_s1 + $0xf8] sm:$0xff]   ;;  %v2697_v18 = vld [vmem:[%s3417_s2] sm:$0xff]  }
  0x8b   : > { %v1287_v46 = vpack.c.bf16 %v1174_v30, %v1174_v30  ;;  %v1405_v57 = vpack.c.bf16 %v1277_v20, %v1277_v20  ;;  %vm1611_vm2 = vcmp.eq.s32.totalorder %v1609_v9, 0  ;;  %vm1610_vm4 = vcmp.lt.s32.totalorder %v1609_v9, 2  ;;  %v2698_v9 = vld [vmem:[%s3417_s2 + $0x8] sm:$0xff]  }
  0x8c   : > { %2454 = vmatmul.mubr.msk.bf16.gmra.mrb[4].mxu1 %vm441_vm0, %v2678_v24  ;;  %v2332_v48 = vadd.s32 4294967294, %v1583_v12  ;;  %vm1713_vm5 = vcmp.lt.s32.totalorder %v1712_v35, 2  ;;  %vm1998_vm7 = vcmask 523264   ;;  %v2700_v35 = vld [vmem:[%s3417_s2 + $0x18] sm:$0xff]  }
  0x8d   : > { %2459 = vmatprep.mubr.msk.bf16.mxu1 %vm441_vm0, %v2681_v44  ;;  %v1321_v47 = vand.u32 %v1287_v46, %v3070_v11  ;;  %v1439_v5 = vand.u32 %v1405_v57, %v3070_v11 }
  0x8e   : > { %vm2333_vm12 = vcmp.lt.s32.totalorder %v2332_v48, 0 }
  0x8f   : > { %2477 = vmatprep.subr.bf16.mxu0 %v1321_v47  ;;  %v1586_v50 = vsel %vm2333_vm12, 0, %v2332_v48 }
  0x90   : > { %2478 = vmatpush3.bf16.msra.mxu0 %v1321_v47  ;;  %v1587_v51 = vsub.s32 32, %v1586_v50  ;;  %v1588_v53 = vshll.u32 %v1579_v28, %v1586_v50  ;;  %v1591_v54 = vsub.s32 4294967266, %v1586_v50 }
  0x91   : > { %2487 = vmatprep.subr.bf16.mxu0 %v1439_v5 }
  0x92   : > { %v1589_v56 = vshrl.u32 %v3235_v33, %v1587_v51  ;;  %v1592_v58 = vadd.s32 127, %v1591_v54  ;;  %v2687_v33 = vld [vmem:[%s3416_s1 + $0xb0] sm:$0xff]  }
  0x93   : > { %2480 = vmatmul.mubr.msk.bf16.vlgmr.msra.gmra.mrb[0].mxu0 %vm441_vm0, %v2676_v49 }
  0x94   : > { %2460 = vmatmul.mubr.msk.bf16.vlgmr.msra.gmra.mrb[0].mxu1 %vm441_vm0, %v2682_v6  ;;  %2488 = vmatpush3.bf16.msra.mxu0 %v1439_v5  ;;  %v1590_v31 = vor.u32 %v1589_v56, %v1588_v53  ;;  %v1593_v22 = vshll.u32 %v1592_v58, 23 }
  0x95   : > { %2463 = vmatprep.mubr.msk.bf16.mxu1 %vm441_vm0, %v2685_v13  ;;  %2483 = vmatprep.mubr.msk.bf16.mxu0 %vm441_vm0, %v2679_v27 }
  0x96   : > { %v1594_v62 = vor.u32 4788187, %v1593_v22  ;;  %v1597_v1 = vcvt.s32.f32 %v1590_v31 }
  0x98   : > { %v1595_v8 = vand.u32 2147483647, %v1594_v62 }
  0x9a   : > { %v1598_v52 = vmul.f32 %v1597_v1, %v1595_v8 }
  0x9b   : > { %2484 = vmatmul.mubr.msk.bf16.gmra.mrb[4].mxu0 %vm441_vm0, %v2680_v61 }
  0x9c   : > { %2464 = vmatmul.mubr.msk.bf16.gmra.mrb[4].mxu1 %vm441_vm0, %v2686_v60  ;;  %2489 = vmatprep.mubr.msk.bf16.mxu0 %vm441_vm0, %v2683_v63  ;;  %v1599_v0 = vxor.u32 2147483648, %v1598_v52 }
  0x9d   : > { %2525 = vmatprep.mubr.msk.bf16.mxu1 %vm1998_vm7, %v2697_v18 }
  0x9e   : > { %v1600_v2 = vsel %vm1517_vm13, %v1599_v0, %v1598_v52 }
  0x9f   : > { %v1603_v7 = vsel %vm1516_vm14, %v3013_v4, %v1600_v2  ;;  %v2691_v4 = vld [vmem:[%s3416_s1 + $0xd0] sm:$0xff]  }
  0xa0   : > { %2713 = vcosq.f32 %v1603_v7 }
  0xa1   : > { %2715 = vsinq.f32 %v1603_v7 }
  0xa3   : > { %2490 = vmatmul.mubr.msk.bf16.vlgmr.msra.gmra.mrb[0].mxu0 %vm441_vm0, %v2684_v29 }
  0xa4   : > { %2493 = vmatprep.mubr.msk.bf16.mxu0 %vm441_vm0, %v2687_v33 }
  0xaa   : > { %v2714_v10 = vpop.eup %2713 }
  0xab   : > { %2494 = vmatmul.mubr.msk.bf16.gmra.mrb[4].mxu0 %vm441_vm0, %v2688_v40  ;;  %v2716_v14 = vpop.eup %2715  ;;  %v1615_v16 = vxor.u32 2147483648, %v2714_v10  ;;  %v2699_v40 = vld [vmem:[%s3417_s2 + $0x10] sm:$0xff]  }
  0xac   : > { %2499 = vmatprep.mubr.msk.bf16.mxu0 %vm441_vm0, %v2689_v3  ;;  %v1612_v17 = vxor.u32 2147483648, %v2716_v14  ;;  %v2792_v3 = vmov 0.0  }
  0xad   : > { %v1616_v26 = vsel %vm1614_vm15, %v1615_v16, %v2716_v14  ;;  %v1719_v19 = vsel %vm1717_vm1, %v1615_v16, %v2716_v14 }
  0xae   : > { %v1613_v24 = vsel %vm1611_vm2, %v2714_v10, %v1612_v17  ;;  %v1716_v25 = vsel %vm1714_vm3, %v2714_v10, %v1612_v17 }
  0xaf   : > { %v1617_v37 = vsel %vm1610_vm4, %v1613_v24, %v1616_v26  ;;  %v1720_v44 = vsel %vm1713_vm5, %v1716_v25, %v1719_v19 }
  0xb0   : > { %v1618_v15 = vsel %vm1607_vm6, nan, %v1617_v37  ;;  %v1721_v21 = vsel %vm1607_vm6, nan, %v1720_v44 }
  0xb1   : > { %v1731_v28 = vpack.c.bf16 %v1618_v15, %v1618_v15  ;;  %v1849_v32 = vpack.c.bf16 %v1721_v21, %v1721_v21 }
  0xb3   : > { %v1765_v38 = vand.u32 %v1731_v28, %v3070_v11  ;;  %v1883_v39 = vand.u32 %v1849_v32, %v3070_v11  ;;  %v2692_v11 = vld [vmem:[%s3416_s1 + $0xd8] sm:$0xff]  }
  0xb5   : > { %2497 = vmatprep.subr.bf16.mxu0 %v1765_v38 }
  0xb6   : > { %2498 = vmatpush3.bf16.msra.mxu0 %v1765_v38 }
  0xb7   : > { %2507 = vmatprep.subr.bf16.mxu0 %v1883_v39 }
  0xb9   : > { %2500 = vmatmul.mubr.msk.bf16.vlgmr.msra.gmra.mrb[0].mxu0 %vm441_vm0, %v2690_v55 }
  0xba   : > { %2508 = vmatpush3.bf16.msra.mxu0 %v1883_v39  ;;  %2503 = vmatprep.mubr.msk.bf16.mxu0 %vm441_vm0, %v2691_v4 }
  0xc1   : > { %2504 = vmatmul.mubr.msk.bf16.gmra.mrb[4].mxu0 %vm441_vm0, %v2692_v11 }
  0xc2   : > { %2509 = vmatprep.mubr.msk.bf16.mxu0 %vm441_vm0, %v2693_v59 }
  0xc9   : > { %2510 = vmatmul.mubr.msk.bf16.vlgmr.msra.gmra.mrb[0].mxu0 %vm441_vm0, %v2694_v41  ;;  %v2088_v41 = vld [vmem:[%s3418_s3] sm:$0xf] }
  0xca   : > { %2513 = vmatprep.mubr.msk.bf16.mxu0 %vm441_vm0, %v2695_v43 }
  0xd1   : > { %2514 = vmatmul.mubr.msk.bf16.gmra.mrb[4].mxu0 %vm441_vm0, %v2696_v45  ;;  %vm2793_vm0 = vmmov 0  }
 0x167   : > { %v2461_v30 = vpop.f32.mrb[0].mxu1 }
 0x168   : > { %v913_v20 = vpop.f32.mrb[1].mxu1 }
 0x169   : > { %v2462_v46 = vpop.f32.mrb[2].mxu1 }
 0x16a   : > { %v916_v57 = vpop.f32.mrb[3].mxu1 }
 0x16f   : > { %v2465_v6 = vpop.f32.mrb[4].mxu1 }
 0x170   : > { %v929_v12 = vpop.f32.mrb[5].mxu1 }
 0x171   : > { %v2466_v13 = vpop.f32.mrb[6].mxu1 }
 0x172   : > { %v932_v47 = vpop.f32.mrb[7].mxu1 }
 0x19c   : > { %v2511_v5 = vpop.f32.mrb[0].mxu0 }
 0x19d   : > { %v2545_v48 = vadd.f32 %v2511_v5, %v2461_v30  ;;  %v1919_v49 = vpop.f32.mrb[1].mxu0 }
 0x19e   : > { %v2546_v27 = vadd.f32 %v1919_v49, %v913_v20  ;;  %v2512_v50 = vpop.f32.mrb[2].mxu0 }
 0x19f   : > { %v2547_v51 = vadd.f32 %v2512_v50, %v2462_v46  ;;  %v1922_v53 = vpop.f32.mrb[3].mxu0  ;;  %v1960_v56 = vmax.f32 %v2545_v48, 0.0 }
 0x1a0   : > { %v2548_v54 = vadd.f32 %v1922_v53, %v916_v57  ;;  %v1958_v60 = vmax.f32 %v2546_v27, 0.0 }
 0x1a1   : > { %v1961_v58 = vmax.f32 %v2547_v51, 0.0 }
 0x1a2   : > { %v1959_v31 = vmax.f32 %v2548_v54, 0.0 }
 0x1a3   : > { %v1967_v22 = vpack.c.bf16 %v1961_v58, %v1960_v56 }
 0x1a4   : > { %v1966_v61 = vpack.c.bf16 %v1959_v31, %v1958_v60  ;;  %v2515_v62 = vpop.f32.mrb[4].mxu0 }
 0x1a5   : > { %v2549_v1 = vadd.f32 %v2515_v62, %v2465_v6  ;;  %v1935_v63 = vpop.f32.mrb[5].mxu0 }
 0x1a6   : > { %v2550_v8 = vadd.f32 %v1935_v63, %v929_v12  ;;  %v2516_v34 = vpop.f32.mrb[6].mxu0  ;;  %2517 = vmatprep.subr.bf16.mxu1 %v1966_v61 }
 0x1a7   : > { %v2551_v52 = vadd.f32 %v2516_v34, %v2466_v13  ;;  %v1938_v0 = vpop.f32.mrb[7].mxu0  ;;  %2518 = vmatpush3.bf16.msra.mxu1 %v1966_v61  ;;  %v1964_v29 = vmax.f32 %v2549_v1, 0.0 }
 0x1a8   : > { %v2552_v36 = vadd.f32 %v1938_v0, %v932_v47  ;;  %2519 = vmatprep.subr.bf16.mxu1 %v1967_v22  ;;  %v1962_v7 = vmax.f32 %v2550_v8, 0.0 }
 0x1a9   : > { %v1965_v2 = vmax.f32 %v2551_v52, 0.0 }
 0x1aa   : > { %v1963_v23 = vmax.f32 %v2552_v36, 0.0 }
 0x1ab   : > { %v1969_v33 = vpack.c.bf16 %v1965_v2, %v1964_v29  ;;  %2520 = vmatpush3.bf16.msra.mxu1 %v1967_v22 }
 0x1ac   : > { %v1968_v42 = vpack.c.bf16 %v1963_v23, %v1962_v7 }
 0x1ae   : > { %2521 = vmatprep.subr.bf16.mxu1 %v1968_v42 }
 0x1af   : > { %2522 = vmatpush3.bf16.msra.mxu1 %v1968_v42 }
 0x1b0   : > { %2523 = vmatprep.subr.bf16.mxu1 %v1969_v33 }
 0x1b3   : > { %2524 = vmatpush3.bf16.msra.mxu1 %v1969_v33 }
 0x1b4   : > { %2533 = vmatprep.subr.bf16.mxu1 %v2792_v3 }
 0x1b6   : > { %2526 = vmatmul.mubr.msk.bf16.vlgmr.msra.gmra.mrb[8].mxu1 %vm1998_vm7, %v2698_v9 }
 0x1b7   : > { %2529 = vmatprep.mubr.msk.bf16.mxu1 %vm1998_vm7, %v2699_v40 }
 0x1be   : > { %2530 = vmatmul.mubr.msk.bf16.gmra.mrb[12].mxu1 %vm1998_vm7, %v2700_v35 }
 0x1bf   : > { %2541 = vmatprep.mubr.msk.bf16.mxu1 %vm2793_vm0, %v2792_v3 }
 0x289   : > { %v2527_v10 = vpop.f32.mrb[8].mxu1 }
 0x28a   : > { %v2045_v14 = vpop.f32.mrb[9].mxu1  ;;  %v2078_v17 = vmax.f32 %v2527_v10, 0.0 }
 0x28b   : > { %v2528_v16 = vpop.f32.mrb[10].mxu1  ;;  %v2076_v24 = vmax.f32 %v2045_v14, 0.0 }
 0x28c   : > { %v2079_v26 = vmax.f32 %v2528_v16, 0.0  ;;  %v2048_v19 = vpop.f32.mrb[11].mxu1 }
 0x28d   : > { %v2077_v25 = vmax.f32 %v2048_v19, 0.0 }
 0x28e   : > { %v2085_v37 = vpack.c.bf16 %v2079_v26, %v2078_v17 }
 0x28f   : > { %v2084_v44 = vpack.c.bf16 %v2077_v25, %v2076_v24 }
 0x291   : > { %v2531_v15 = vpop.f32.mrb[12].mxu1  ;;  %2534 = vmatpush3.bf16.msra.mxu1 %v2084_v44 }
 0x292   : > { %v2061_v21 = vpop.f32.mrb[13].mxu1  ;;  %2535 = vmatprep.subr.bf16.mxu1 %v2792_v3  ;;  %v2082_v32 = vmax.f32 %v2531_v15, 0.0 }
 0x293   : > { %v2532_v28 = vpop.f32.mrb[14].mxu1  ;;  %v2080_v55 = vmax.f32 %v2061_v21, 0.0 }
 0x294   : > { %v2083_v38 = vmax.f32 %v2532_v28, 0.0  ;;  %v2064_v39 = vpop.f32.mrb[15].mxu1 }
 0x295   : > { %v2081_v4 = vmax.f32 %v2064_v39, 0.0  ;;  %2536 = vmatpush3.bf16.msra.mxu1 %v2085_v37 }
 0x296   : > { %v2087_v11 = vpack.c.bf16 %v2083_v38, %v2082_v32  ;;  %2537 = vmatprep.subr.bf16.mxu1 %v2792_v3 }
 0x297   : > { %v2086_v59 = vpack.c.bf16 %v2081_v4, %v2080_v55 }
 0x299   : > { %2538 = vmatpush3.bf16.msra.mxu1 %v2086_v59 }
 0x29a   : > { %2539 = vmatprep.subr.bf16.mxu1 %v2792_v3 }
 0x29d   : > { %2540 = vmatpush3.bf16.msra.mxu1 %v2087_v11 }
 0x2a0   : > { %2542 = vmatmul.mubr.msk.bf16.vlgmr.msra.gmra.mrb[16].mxu1 %vm1998_vm7, %v2088_v41 }
 0x373   : > { %v2126_v43 = vpop.f32.mrb[16].mxu1 }
 0x374   : > { %v2379_v45 = vmul.f32 -1.442695, %v2126_v43  ;;  %v2543_v18 = vpop.f32.mrb[17].mxu1 }
 0x375   : > { %v2129_v30 = vpop.f32.mrb[18].mxu1 }
 0x376   : > { %2717 = vpow2.f32 %v2379_v45  ;;  %v2544_v20 = vpop.f32.mrb[19].mxu1 }
 0x380   : > { %v2718_v46 = vpop.eup %2717 }
 0x381   : > { %v2135_v57 = vadd.f32 1.0, %v2718_v46 }
 0x383   : > { %2719 = vrcp.f32 %v2135_v57 }
 0x38d   : > { %v2720_v6 = vpop.eup %2719 }
 0x38e   : > { %2138 = vst [vmem:[%s188_s20] sm:$0xff] %v2720_v6 }
 0x38f   : > { %2734 = shalt.err (!%p2731_p3)
}
 0x390   : > { %s2735_s7 = scalar_lea.hbm %s3373_s28, 128  ;;  %s2739_s10 = scalar_lea.hbm %s3419_s4, 256 }
 0x391   : > { %p2736_p4 = scmp.ne.s32.totalorder %s3373_s28, %s2735_s7  ;;  %p2740_p9 = scmp.lt.u32.totalorder %s3373_s28, %s3419_s4 }
 0x392   : > { %p2741_p10 = scmp.lt.u32.totalorder %s2739_s10, %s2735_s7  ;;  %p2743_p12 = scmp.lt.u32.totalorder %s2735_s7, %s3373_s28 }
 0x393   : > { %p2737_p7 = pnand %p2736_p4, %p2858_p5 }
 0x394   : > { %p2742_p11 = por %p2741_p10, %p2740_p9 }
 0x395   : > { %p2738_p8 = pneg %p2737_p7 }
 0x396   : > { %p2744_p13 = por %p2743_p12, %p2742_p11 }
 0x398   : > { %p2745_p0 = pnand %p2744_p13, %p2738_p8 }
 0x39a   : > { %2748 = shalt.err (!%p2745_p0)
}
 0x39b   : > { %2617 = dma.vmem_to_hbm [thread:$0]  (%p2858_p5), %s3375_s22, 128, %s3373_s28, %s2140_s29  }
 0x39c PF: > { %p2623_p1 = scmp.ge.s32.totalorder %s2783_s18, 2  ;;  %s2165_s13 = sand.u32 1, %s2771_s15  }
 0x39d   : > { %s2166_s14 = scalar_lea.sflag [#allocation3], %s2165_s13 }
 0x39e   : > { %p2620_p2 = pnand %p2623_p1, %p2862_p6 }
 0x3a0   : > { %2766 = dma.done.wait (!%p2620_p2), %s2166_s14, 128  }
 0x3a1   : > { %2768 = vsyncadd (!%p2620_p2), %s2166_s14, 4294967168  ;;  %p14_p3 = scmp.ge.s32.totalorder %s2845_s21, 4   ;;  %s3428_s15 = smov %s2775_s16 }
 0x3a2   : > { %s3429_s16 = smov %s2779_s17  ;;  %s3430_s17 = smov %s2856_s24 }
 0x3a3   : > { %s3431_s18 = smov %s2845_s21  ;;  %16 = sbr.rel (!%p14_p3) target bundleno = 3 (0x3), region = 78 }
 0x3aa   :  { %2171 = vsyncpa [#allocation3], 1 }
 0x3ab   :  { %2173 = vsyncpa [#allocation3 + $0x1], 1 }

</bundles_post_ra>
